<compile_context>
chip_gen: v5e
topology: v5e:2x2
jax: 0.10.0
libtpu: 0.0.40
codegen_flags: <defaults>
</compile_context>

<pallas_src>
import functools

import jax
import jax.numpy as jnp
from jax import lax
from jax.experimental import pallas as pl
from jax.experimental.pallas import tpu as pltpu


# ----------------------------------------------------------------------------
# Helpers
# ----------------------------------------------------------------------------
def _vmem_limit_bytes(block_bytes, scratch_bytes=0):
    """Rough scoped-VMEM requirement: double-buffered blocks + scratch."""
    need = int(2 * block_bytes * 1.25) + int(scratch_bytes) + (4 << 20)
    return max(32 << 20, min(need, 100 << 20))


# ----------------------------------------------------------------------------
# Kernel 1: grouped conv (+bias) + GroupNorm + LeakyReLU + inception branch
# sum, tiled over (batch, branch, kh-row of the conv kernel).
# ----------------------------------------------------------------------------
def _branch_conv_gn_act_kernel(ks_ref, x_ref, w_ref, bgb_ref, avg_ref, o_ref,
                               acc_ref, sum_ref, *, H, W, K_max, eps,
                               neg_slope):
    # ks_ref  : SMEM (n_br,) int32  per-branch kernel size (scalar prefetch)
    # x_ref   : (K_max, Hp*W, Cin)  bf16  width-pre-shifted, padded activations
    # w_ref   : (K_max*Cin, Cout)   bf16  dense block-diag taps for one kh row
    # bgb_ref : (3, Cout)           f32   packed [bias; gamma; beta]
    # avg_ref : (Cout, Cout)        f32   group-mean matrix (hoisted, resident)
    # o_ref   : (HW, Cout)          bf16  inception output (written once)
    # acc_ref : (HW, Cout)          f32   conv accumulator (resident over kh)
    # sum_ref : (HW, Cout)          f32   branch-sum accumulator (over branches)
    HW = H * W
    Cin = x_ref.shape[-1]
    Cout = o_ref.shape[-1]

    br = pl.program_id(1)
    kh = pl.program_id(2)
    n_br = pl.num_programs(1)

    kb = ks_ref[br]                       # this branch's kernel size
    off = (K_max - kb) // 2               # centered offset inside K_max window

    # ---- init conv accumulator with the broadcast bias (saves a full pass) --
    @pl.when(kh == 0)
    def _():
        acc_ref[...] = jnp.broadcast_to(bgb_ref[0:1, :], (HW, Cout))

    # ---- conv taps for this kh row: only the branch's active taps run ------
    row_active = jnp.logical_and(kh >= off, kh < off + kb)

    @pl.when(row_active)
    def _():
        start = kh * W
        if W % 8 == 0:
            start = pl.multiple_of(start, 8)
        for kw in range(K_max):
            kw_active = jnp.logical_and(kw >= off, kw < off + kb)

            @pl.when(kw_active)
            def _(kw=kw, start=start):
                xs = x_ref[kw, pl.ds(start, HW), :]               # (HW, Cin)
                wk = w_ref[kw * Cin:(kw + 1) * Cin, :]            # (Cin, Cout)
                acc_ref[...] += jnp.dot(xs, wk,
                                        preferred_element_type=jnp.float32)

    # ---- last kh step: GroupNorm + LeakyReLU + fused branch sum ------------
    @pl.when(kh == K_max - 1)
    def _():
        y = acc_ref[...]                                          # f32, has bias
        s1 = jnp.sum(y, axis=0, keepdims=True)                    # (1, Cout)
        mean_c = jnp.dot(s1, avg_ref[...],
                         preferred_element_type=jnp.float32)      # group mean
        yc = y - mean_c
        s2 = jnp.sum(yc * yc, axis=0, keepdims=True)
        var_c = jnp.dot(s2, avg_ref[...],
                        preferred_element_type=jnp.float32)       # group var
        yn = yc * lax.rsqrt(var_c + eps) * bgb_ref[1:2, :] + bgb_ref[2:3, :]
        yn = jnp.where(yn >= 0.0, yn, neg_slope * yn)             # LeakyReLU

        @pl.when(br == 0)
        def _():
            sum_ref[...] = jnp.zeros_like(sum_ref)
        sum_ref[...] += yn                                        # f32 accumulate

        @pl.when(br == n_br - 1)
        def _():
            o_ref[...] = sum_ref[...].astype(o_ref.dtype)         # bf16 writeback


@functools.lru_cache(maxsize=None)
def _make_inception_call(B, H, W, Cin, Cout, K_max, n_br, eps, neg_slope):
    p_max = K_max // 2
    Hp = H + 2 * p_max
    HW = H * W

    kernel = functools.partial(_branch_conv_gn_act_kernel, H=H, W=W,
                               K_max=K_max, eps=eps, neg_slope=neg_slope)

    # index_maps receive (grid indices..., prefetch refs...)
    def x_map(bi, br, kh, ks):
        return (bi, 0, 0, 0)

    def w_map(bi, br, kh, ks):
        kb = ks[br]
        off = (K_max - kb) // 2
        # clamp kh into the branch's active window: inactive rows (all zeros)
        # repeat the previous block index -> never re-DMA'd, never computed.
        kh_c = jnp.minimum(jnp.maximum(kh, off), off + kb - 1)
        return (br * K_max + kh_c, 0, 0)

    def bgb_map(bi, br, kh, ks):
        return (br, 0, 0)

    def avg_map(bi, br, kh, ks):
        return (0, 0)

    def o_map(bi, br, kh, ks):
        return (bi, 0, 0)

    block_bytes = (K_max * Hp * W * Cin * 2 +      # activation slab
                   K_max * Cin * Cout * 2 +        # weight row block
                   3 * Cout * 4 +                  # bias/gamma/beta
                   Cout * Cout * 4 +               # group-mean matrix
                   HW * Cout * 2)                  # output block
    scratch_bytes = 2 * HW * Cout * 4

    call = pl.pallas_call(
        kernel,
        out_shape=jax.ShapeDtypeStruct((B, HW, Cout), jnp.bfloat16),
        grid_spec=pltpu.PrefetchScalarGridSpec(
            num_scalar_prefetch=1,
            grid=(B, n_br, K_max),
            in_specs=[
                # activation block depends on batch only -> stays resident
                # while the (branch, kh) axes advance.
                pl.BlockSpec((None, K_max, Hp * W, Cin), x_map),
                pl.BlockSpec((None, K_max * Cin, Cout), w_map),
                pl.BlockSpec((None, 3, Cout), bgb_map),
                pl.BlockSpec((Cout, Cout), avg_map),
            ],
            out_specs=pl.BlockSpec((None, HW, Cout), o_map),
            scratch_shapes=[pltpu.VMEM((HW, Cout), jnp.float32),   # conv acc
                            pltpu.VMEM((HW, Cout), jnp.float32)],  # branch sum
        ),
        compiler_params=pltpu.CompilerParams(
            dimension_semantics=("parallel", "arbitrary", "arbitrary"),
            vmem_limit_bytes=_vmem_limit_bytes(block_bytes, scratch_bytes)),
    )
    return jax.jit(call)


# ----------------------------------------------------------------------------
# Kernel 2: 1x1 conv (no groups / norm / act), row-tiled and pipelined.
# ----------------------------------------------------------------------------
def _pointwise_conv_kernel(x_ref, w_ref, b_ref, o_ref):
    # x_ref: (TN, Cin) bf16 ; w_ref: (Cin, Cout) bf16 ; b_ref: (1, Cout) f32
    o_ref[...] = (jnp.dot(x_ref[...], w_ref[...],
                          preferred_element_type=jnp.float32)
                  + b_ref[...]).astype(o_ref.dtype)


@functools.lru_cache(maxsize=None)
def _make_pointwise_call(Np, Cin, Cout, TN):
    block_bytes = TN * Cin * 2 + Cin * Cout * 2 + Cout * 4 + TN * Cout * 2
    call = pl.pallas_call(
        _pointwise_conv_kernel,
        out_shape=jax.ShapeDtypeStruct((Np, Cout), jnp.bfloat16),
        grid_spec=pltpu.PrefetchScalarGridSpec(
            num_scalar_prefetch=0,
            grid=(Np // TN,),
            in_specs=[
                pl.BlockSpec((TN, Cin), lambda i: (i, 0)),
                pl.BlockSpec((Cin, Cout), lambda i: (0, 0)),
                pl.BlockSpec((1, Cout), lambda i: (0, 0)),
            ],
            out_specs=pl.BlockSpec((TN, Cout), lambda i: (i, 0)),
        ),
        compiler_params=pltpu.CompilerParams(
            dimension_semantics=("parallel",),
            vmem_limit_bytes=_vmem_limit_bytes(block_bytes)),
    )
    return jax.jit(call)


# ----------------------------------------------------------------------------
# Wrappers
# ----------------------------------------------------------------------------
def pointwise_conv(x_nhwc, weight, bias):
    """1x1 Conv2d. x: (B,H,W,Cin), weight: (Cout,Cin,1,1), bias: (Cout,)."""
    B, H, W, Cin = x_nhwc.shape
    Cout = weight.shape[0]
    N = B * H * W
    TN = 1024 if N >= 8192 else 256           # row tile (pipelined, 'parallel')
    TN = max(8, min(TN, (N // 8) * 8 if N >= 8 else 8))
    Np = -(-N // TN) * TN
    x2 = x_nhwc.reshape(N, Cin).astype(jnp.bfloat16)
    if Np != N:
        x2 = jnp.pad(x2, ((0, Np - N), (0, 0)))
    w2 = jnp.transpose(weight.reshape(Cout, Cin), (1, 0)).astype(jnp.bfloat16)
    b2 = bias.reshape(1, Cout).astype(jnp.float32)
    out = _make_pointwise_call(Np, Cin, Cout, TN)(x2, w2, b2)
    return out[:N].reshape(B, H, W, Cout)                      # bf16


def inception_branch_sum(z_nhwc, branches, groups, *, eps=1e-5, neg_slope=0.2):
    """sum_over_branches LeakyReLU(GroupNorm(GroupConv2d(z))) -- one kernel."""
    B, H, W, Cin = z_nhwc.shape
    n_br = len(branches)
    kers = [int(br["ker"]) for br in branches]
    K_max = max(kers)
    assert K_max % 2 == 1, "odd kernel sizes expected ('same' conv)"
    p_max = K_max // 2
    Hp = H + 2 * p_max
    HW = H * W
    G = groups
    Cout = branches[0]["w"].shape[0]
    Cin_g = Cin // G
    Cout_g = Cout // G

    # Pad once, pre-shift along width into K_max slabs so every conv tap is a
    # 2-D, sublane-aligned slice inside the kernel (no K^2 HBM im2col).
    xpad = jnp.pad(z_nhwc.astype(jnp.bfloat16),
                   ((0, 0), (p_max, p_max), (p_max, p_max), (0, 0)))
    xshift = jnp.stack(
        [xpad[:, :, kw:kw + W, :].reshape(B, Hp * W, Cin) for kw in range(K_max)],
        axis=1)                                   # (B, K_max, Hp*W, Cin) bf16

    # Weights: one (K_max*Cin, Cout) slab per (branch, kh row).  Groups are
    # merged into a dense block-diagonal (Cin, Cout) tap; rows outside a
    # branch's centered K x K window stay zero and are never DMA'd / computed.
    w_all = jnp.zeros((n_br * K_max, K_max * Cin, Cout), jnp.bfloat16)
    bgb_list = []
    for bi, brp in enumerate(branches):
        K = int(brp["ker"])
        off = (K_max - K) // 2
        wg = brp["w"].reshape(G, Cout_g, Cin_g, K, K)
        wg = jnp.transpose(wg, (3, 4, 0, 2, 1))   # (K, K, G, Cin_g, Cout_g)
        dense = jnp.zeros((K, K, Cin, Cout), jnp.float32)
        for g in range(G):
            dense = dense.at[:, :, g * Cin_g:(g + 1) * Cin_g,
                             g * Cout_g:(g + 1) * Cout_g].set(wg[:, :, g])
        dense = dense.astype(jnp.bfloat16)
        for kh in range(K):
            w_all = w_all.at[bi * K_max + off + kh,
                             off * Cin:(off + K) * Cin, :].set(
                                 dense[kh].reshape(K * Cin, Cout))
        bgb_list.append(jnp.stack([brp["b"], brp["gamma"], brp["beta"]], axis=0))
    bgb_all = jnp.stack(bgb_list, axis=0).astype(jnp.float32)   # (n_br, 3, Cout)

    # Group-averaging matrix, hoisted out of the kernel (constant block index).
    gidx = jnp.arange(Cout) // Cout_g
    avg = jnp.where(gidx[:, None] == gidx[None, :],
                    1.0 / float(HW * Cout_g), 0.0).astype(jnp.float32)

    ks = jnp.asarray(kers, dtype=jnp.int32)       # scalar-prefetched

    call = _make_inception_call(B, H, W, Cin, Cout, K_max, n_br,
                                float(eps), float(neg_slope))
    out = call(ks, xshift, w_all, bgb_all, avg)
    return out.reshape(B, H, W, Cout)             # bf16


# ----------------------------------------------------------------------------
# Inception / Mid_Xnet: parameter init + forward (NHWC activations throughout)
# ----------------------------------------------------------------------------
def init_inception(key, C_in, C_hid, C_out, incep_ker, groups):
    params = {}
    k1, k2, key = jax.random.split(key, 3)
    params["conv1_w"] = jax.random.normal(
        k1, (C_hid, C_in, 1, 1), jnp.float32) / jnp.sqrt(C_in)
    params["conv1_b"] = 0.01 * jax.random.normal(k2, (C_hid,), jnp.float32)
    branches = []
    g_eff = groups if (C_hid % groups == 0) else 1
    for ker in incep_ker:
        kw_, kb_, kg_, kbt_, key = jax.random.split(key, 5)
        fan_in = (C_hid // g_eff) * ker * ker
        branches.append(dict(
            w=jax.random.normal(kw_, (C_out, C_hid // g_eff, ker, ker),
                                jnp.float32) / jnp.sqrt(fan_in),
            b=0.01 * jax.random.normal(kb_, (C_out,), jnp.float32),
            gamma=1.0 + 0.1 * jax.random.normal(kg_, (C_out,), jnp.float32),
            beta=0.1 * jax.random.normal(kbt_, (C_out,), jnp.float32),
            ker=ker,
        ))
    params["branches"] = branches
    return params, key


def apply_inception(params, x_nhwc, groups):
    C_hid = params["conv1_w"].shape[0]
    z = pointwise_conv(x_nhwc, params["conv1_w"], params["conv1_b"])  # bf16
    g_eff = groups if (C_hid % groups == 0) else 1
    return inception_branch_sum(z, params["branches"], g_eff)         # bf16


def init_mid_xnet(key, channel_in, channel_hid, N_T, incep_ker, groups):
    enc, dec = [], []
    p, key = init_inception(key, channel_in, channel_hid // 2, channel_hid,
                            incep_ker, groups); enc.append(p)
    for _ in range(1, N_T - 1):
        p, key = init_inception(key, channel_hid, channel_hid // 2, channel_hid,
                                incep_ker, groups); enc.append(p)
    p, key = init_inception(key, channel_hid, channel_hid // 2, channel_hid,
                            incep_ker, groups); enc.append(p)

    p, key = init_inception(key, channel_hid, channel_hid // 2, channel_hid,
                            incep_ker, groups); dec.append(p)
    for _ in range(1, N_T - 1):
        p, key = init_inception(key, 2 * channel_hid, channel_hid // 2,
                                channel_hid, incep_ker, groups); dec.append(p)
    p, key = init_inception(key, 2 * channel_hid, channel_hid // 2, channel_in,
                            incep_ker, groups); dec.append(p)
    return dict(enc=enc, dec=dec), key


def mid_xnet_forward(params, x, N_T, groups):
    B, T, C, H, W = x.shape
    z = x.reshape(B, T * C, H, W)
    z = jnp.transpose(z, (0, 2, 3, 1))               # NCHW -> NHWC (once)
    skips = []
    for i in range(N_T):
        z = apply_inception(params["enc"][i], z, groups)
        if i < N_T - 1:
            skips.append(z)
    z = apply_inception(params["dec"][0], z, groups)
    for i in range(1, N_T):
        z = apply_inception(params["dec"][i],
                            jnp.concatenate([z, skips[-i]], axis=-1), groups)
    z = jnp.transpose(z, (0, 3, 1, 2)).astype(jnp.float32)   # NHWC -> NCHW
    return z.reshape(B, T, C, H, W)


# ----------------------------------------------------------------------------
# bf16-matched pure-JAX reference (correctness check only)
# ----------------------------------------------------------------------------
def _ref_conv(x, w, b, k, groups):
    out = lax.conv_general_dilated(
        x.astype(jnp.bfloat16), w.astype(jnp.bfloat16),
        window_strides=(1, 1), padding=[(k // 2, k // 2)] * 2,
        dimension_numbers=("NCHW", "OIHW", "NCHW"),
        feature_group_count=groups,
        preferred_element_type=jnp.float32)
    return out + b[None, :, None, None]


def _ref_gn(x, gamma, beta, groups, eps=1e-5):
    B, C, H, W = x.shape
    xg = x.reshape(B, groups, -1)
    mean = xg.mean(-1, keepdims=True)
    var = ((xg - mean) ** 2).mean(-1, keepdims=True)
    xn = ((xg - mean) * lax.rsqrt(var + eps)).reshape(B, C, H, W)
    return xn * gamma[None, :, None, None] + beta[None, :, None, None]


def _ref_inception(p, x, groups):
    C_hid = p["conv1_w"].shape[0]
    z = _ref_conv(x, p["conv1_w"], p["conv1_b"], 1, 1)
    z = z.astype(jnp.bfloat16).astype(jnp.float32)        # kernel emits bf16
    g_eff = groups if (C_hid % groups == 0) else 1
    y = 0.0
    for br in p["branches"]:
        t = _ref_conv(z, br["w"], br["b"], br["ker"], g_eff)
        t = _ref_gn(t, br["gamma"], br["beta"], g_eff)
        t = jnp.where(t >= 0, t, 0.2 * t)
        y = y + t
    return y.astype(jnp.bfloat16).astype(jnp.float32)     # kernel emits bf16


def _ref_mid_xnet(params, x, N_T, groups):
    B, T, C, H, W = x.shape
    z = x.reshape(B, T * C, H, W)
    skips = []
    for i in range(N_T):
        z = _ref_inception(params["enc"][i], z, groups)
        if i < N_T - 1:
            skips.append(z)
    z = _ref_inception(params["dec"][0], z, groups)
    for i in range(1, N_T):
        z = _ref_inception(params["dec"][i],
                           jnp.concatenate([z, skips[-i]], axis=1), groups)
    return z.reshape(B, T, C, H, W)


# ----------------------------------------------------------------------------
if __name__ == "__main__":
    # (B, T, C, H, W); channel_in = T*C must be a multiple of `groups`
    # (last decoder layer's grouped conv / GroupNorm).  Small demo shapes;
    # real SimVP sizes (channel_hid 256-512, incep_ker [3,5,7,11]) reuse the
    # same kernels with wider lane-dense blocks.
    B, T, C, H, W = 2, 4, 2, 16, 16
    channel_in = T * C            # 8
    channel_hid = 32
    N_T = 2
    incep_ker = [3, 5]
    groups = 8

    key = jax.random.PRNGKey(0)
    params, key = init_mid_xnet(key, channel_in, channel_hid, N_T,
                                incep_ker, groups)
    kx, key = jax.random.split(key)
    x = jax.random.normal(kx, (B, T, C, H, W), jnp.float32)

    y = mid_xnet_forward(params, x, N_T, groups)
    y = jax.block_until_ready(y)
    assert y.shape == (B, T, C, H, W)

    y_ref = _ref_mid_xnet(params, x, N_T, groups)
    max_err = float(jnp.max(jnp.abs(y - y_ref)))
    assert max_err < 5e-2, f"mismatch vs bf16-matched reference: {max_err}"

    print("KERNEL_OK")
</pallas_src>

<mosaic_0001>
module attributes {stable_mosaic.version = 11 : i64} {
  func.func @_pointwise_conv_kernel(%arg0: i32, %arg1: memref<256x8xbf16, #tpu.memory_space<vmem>>, %arg2: memref<8x16xbf16, #tpu.memory_space<vmem>>, %arg3: memref<1x16xf32, #tpu.memory_space<vmem>>, %arg4: memref<256x16xbf16, #tpu.memory_space<vmem>>) attributes {dimension_semantics = [#tpu.dimension_semantics<parallel>], iteration_bounds = array<i64: 2>, scalar_prefetch = 0 : i64, scratch_operands = 0 : i64, tpu.core_type = #tpu.core_type<tc>, window_params = [{transform_indices = @transform_0, window_bounds = array<i64: 256, 8>}, {pipeline_mode = #tpu.pipeline_mode<synchronous>, transform_indices = @transform_1, window_bounds = array<i64: 8, 16>}, {pipeline_mode = #tpu.pipeline_mode<synchronous>, transform_indices = @transform_2, window_bounds = array<i64: 1, 16>}, {transform_indices = @transform_3, window_bounds = array<i64: 256, 16>}]} {
    %c0 = arith.constant 0 : index
    %c0_0 = arith.constant 0 : index
    %0 = vector.load %arg1[%c0, %c0_0] : memref<256x8xbf16, #tpu.memory_space<vmem>>, vector<256x8xbf16>
    %c0_1 = arith.constant 0 : index
    %c0_2 = arith.constant 0 : index
    %1 = vector.load %arg2[%c0_1, %c0_2] : memref<8x16xbf16, #tpu.memory_space<vmem>>, vector<8x16xbf16>
    %cst = arith.constant dense<0.000000e+00> : vector<256x16xf32>
    %2 = tpu.matmul %0, %1, %cst {dimension_numbers = #tpu.dot_dimension_numbers<[1], [0], [0], [1], [0, 0, 1, 1], [], []>} : vector<256x8xbf16>, vector<8x16xbf16>, vector<256x16xf32> -> vector<256x16xf32>
    %c0_3 = arith.constant 0 : index
    %c0_4 = arith.constant 0 : index
    %3 = vector.load %arg3[%c0_3, %c0_4] : memref<1x16xf32, #tpu.memory_space<vmem>>, vector<1x16xf32>
    %4 = vector.broadcast %3 : vector<1x16xf32> to vector<256x16xf32>
    %5 = arith.addf %2, %4 : vector<256x16xf32>
    %6 = arith.truncf %5 : vector<256x16xf32> to vector<256x16xbf16>
    %c0_5 = arith.constant 0 : index
    %c0_6 = arith.constant 0 : index
    %7 = vector.load %arg4[%c0_5, %c0_6] : memref<256x16xbf16, #tpu.memory_space<vmem>>, vector<256x16xbf16>
    tpu.vector_store %arg4[%c0_5, %c0_6], %6 {strides = array<i32>} : memref<256x16xbf16, #tpu.memory_space<vmem>>, vector<256x16xbf16>,
    return
  }
  func.func @transform_0(%arg0: i32) -> (i32, i32) {
    %c0_i32 = arith.constant 0 : i32
    %c0_i32_0 = arith.constant 0 : i32
    return %arg0, %c0_i32 : i32, i32
  }
  func.func @transform_1(%arg0: i32) -> (i32, i32) {
    %c0_i32 = arith.constant 0 : i32
    %c0_i32_0 = arith.constant 0 : i32
    %c0_i32_1 = arith.constant 0 : i32
    return %c0_i32, %c0_i32_0 : i32, i32
  }
  func.func @transform_2(%arg0: i32) -> (i32, i32) {
    %c0_i32 = arith.constant 0 : i32
    %c0_i32_0 = arith.constant 0 : i32
    %c0_i32_1 = arith.constant 0 : i32
    return %c0_i32, %c0_i32_0 : i32, i32
  }
  func.func @transform_3(%arg0: i32) -> (i32, i32) {
    %c0_i32 = arith.constant 0 : i32
    %c0_i32_0 = arith.constant 0 : i32
    return %arg0, %c0_i32 : i32, i32
  }
}

</mosaic_0001>

<bundles_post_ra>
// kernel: tpu_custom_call.1
= control target key start
LH: loop header
LB: loop body
LE: loop exit
PB: predicated region body
PF: predicated region fallthrough
CT: control target
= control target key end

     0   :  { %s702_s12 = smov 0   ;;  %s848_s0 = inlined_call_operand.vmem [shape: bf16[512,8], index: 0, kind: input, shape index: {}]   ;;  %s849_s1 = inlined_call_operand.vmem [shape: bf16[8,16], index: 1, kind: input, shape index: {}]   ;;  %s850_s2 = inlined_call_operand.vmem [shape: f32[1,16], index: 2, kind: input, shape index: {}]   ;;  %s851_s3 = inlined_call_operand.vmem [shape: bf16[512,16], index: 3, kind: output, shape index: {}]  }
   0x1 LB: > { %s555_s13 = sadd.s32 4294967295, %s680_s12   ;;  %p559_p0 = scmp.ge.s32.totalorder %s680_s12, 1  ;;  %s680_s12 = sphi %s702_s12, %s13_s12  }
   0x2   : > { %p138_p1 = scmp.lt.s32.totalorder %s680_s12, 3 }
   0x4   : > { %p139_p2 = pnand %p559_p0, %p138_p1 }
   0x5   : > { %s560_s16 = sshll.u32 (!%p139_p2), %s555_s13, 5 }
   0x6   : > { %142 = sbr.rel (%p139_p2) target bundleno = 211 (0xd3), region = 32  ;;  %p163_p3 = scmp.lt.s32.totalorder (!%p139_p2), %s560_s16, 63 }
   0xb   : > { %v207_v0 = vld [vmem:[%s849_s1] sm:$0xf]  ;;  %vm341_vm0 = vcmask 1043456   ;;  %s853_s16 = smov (!%p163_p3, %s560_s16), 63  ;;  %vm292_vm1 = vcmask 64512   ;;  %vm466_vm2 = vcmask 125952  }
   0xc   : > { %v343_v1 = vsel %vm341_vm0, %v207_v0, 0  ;;  %s561_s17 = sshll.u32 %s853_s16, 2  ;;  %v740_v18 = vld [vmem:[%s850_s2] ss:$0 sm:$0xff] }
   0xd   : > { %352 = vmatpush.bf16.msra.mxu0 %v343_v1  ;;  %662 = vmatpush.bf16.msra.mxu1 %v343_v1  ;;  %s166_s20 = scalar_lea.vmem %s848_s0, %s561_s17  ;;  %s749_s25 = scalar_lea.vmem %s851_s3, %s561_s17 }
   0xe   : > { %663 = vmatpush.bf16.msra.mxu2 %v343_v1  ;;  %664 = vmatpush.bf16.msra.mxu3 %v343_v1  ;;  %v646_v2 = vld [vmem:[%s166_s20] sm:$0xff]  ;;  %v647_v6 = vld [vmem:[%s166_s20 + $0x8] sm:$0xff]  ;;  %v648_v10 = vld [vmem:[%s166_s20 + $0x10] sm:$0xff] }
   0xf   : > { %v650_v3 = vld [vmem:[%s166_s20 + $0x20] sm:$0xff]  ;;  %v651_v7 = vld [vmem:[%s166_s20 + $0x28] sm:$0xff]  ;;  %v652_v11 = vld [vmem:[%s166_s20 + $0x30] sm:$0xff] }
  0x10   : > { %v654_v4 = vld [vmem:[%s166_s20 + $0x40] sm:$0xff]  ;;  %628 = vmatmul.msk.bf16.vlgmr.msra.gmra.mxu0 %vm292_vm1, %v646_v2  ;;  %632 = vmatmul.msk.bf16.vlgmr.msra.gmra.mxu1 %vm292_vm1, %v650_v3  ;;  %v655_v8 = vld [vmem:[%s166_s20 + $0x48] sm:$0xff]  ;;  %v656_v12 = vld [vmem:[%s166_s20 + $0x50] sm:$0xff] }
  0x11   : > { %v658_v5 = vld [vmem:[%s166_s20 + $0x60] sm:$0xff]  ;;  %636 = vmatmul.msk.bf16.vlgmr.msra.gmra.mxu2 %vm292_vm1, %v654_v4  ;;  %v659_v9 = vld [vmem:[%s166_s20 + $0x68] sm:$0xff]  ;;  %v660_v13 = vld [vmem:[%s166_s20 + $0x70] sm:$0xff] }
  0x12   : > { %640 = vmatmul.msk.bf16.vlgmr.msra.gmra.mxu3 %vm292_vm1, %v658_v5  ;;  %v649_v14 = vld [vmem:[%s166_s20 + $0x18] sm:$0xff] }
  0x13   : > { %v653_v15 = vld [vmem:[%s166_s20 + $0x38] sm:$0xff] }
  0x14   : > { %v657_v16 = vld [vmem:[%s166_s20 + $0x58] sm:$0xff] }
  0x15   : > { %v661_v17 = vld [vmem:[%s166_s20 + $0x78] sm:$0xff] }
  0x20   : > { %629 = vmatmul.msk.bf16.gmra.mxu0 %vm292_vm1, %v647_v6  ;;  %633 = vmatmul.msk.bf16.gmra.mxu1 %vm292_vm1, %v651_v7 }
  0x21   : > { %637 = vmatmul.msk.bf16.gmra.mxu2 %vm292_vm1, %v655_v8 }
  0x22   : > { %641 = vmatmul.msk.bf16.gmra.mxu3 %vm292_vm1, %v659_v9 }
  0x30   : > { %630 = vmatmul.msk.bf16.gmra.mxu0 %vm292_vm1, %v648_v10  ;;  %634 = vmatmul.msk.bf16.gmra.mxu1 %vm292_vm1, %v652_v11 }
  0x31   : > { %638 = vmatmul.msk.bf16.gmra.mxu2 %vm292_vm1, %v656_v12 }
  0x32   : > { %642 = vmatmul.msk.bf16.gmra.mxu3 %vm292_vm1, %v660_v13 }
  0x40   : > { %631 = vmatmul.msk.bf16.gmra.mxu0 %vm292_vm1, %v649_v14  ;;  %635 = vmatmul.msk.bf16.gmra.mxu1 %vm292_vm1, %v653_v15 }
  0x41   : > { %639 = vmatmul.msk.bf16.gmra.mxu2 %vm292_vm1, %v657_v16 }
  0x42   : > { %643 = vmatmul.msk.bf16.gmra.mxu3 %vm292_vm1, %v661_v17 }
  0x8d   : > { %v354_v19 = vpop.f32.mrf.mxu0  ;;  %v374_v20 = vpop.f32.mrf.mxu1 }
  0x8e   : > { %v355_v21 = vadd.f32 %v740_v18, %v354_v19  ;;  %v375_v22 = vadd.f32 %v740_v18, %v374_v20 }
  0x90   : > { %v434_v23 = vpack.c.bf16 %v355_v21, %v355_v21  ;;  %v442_v24 = vpack.c.bf16 %v375_v22, %v375_v22 }
  0x92   : > { %467 = vst.msk [vmem:[%s749_s25] sm:$0xf] %vm466_vm2, %v434_v23 }
  0x93   : > { %475 = vst.msk [vmem:[%s749_s25 + $0x20] sm:$0xf] %vm466_vm2, %v442_v24 }
  0x94   : > { %v394_v25 = vpop.f32.mrf.mxu2 }
  0x95   : > { %v414_v26 = vpop.f32.mrf.mxu3  ;;  %v395_v27 = vadd.f32 %v740_v18, %v394_v25  ;;  %v356_v29 = vpop.f32.mrf.mxu0 }
  0x96   : > { %v415_v28 = vadd.f32 %v740_v18, %v414_v26  ;;  %v376_v30 = vpop.f32.mrf.mxu1  ;;  %v357_v31 = vadd.f32 %v740_v18, %v356_v29 }
  0x97   : > { %v377_v32 = vadd.f32 %v740_v18, %v376_v30  ;;  %v450_v33 = vpack.c.bf16 %v395_v27, %v395_v27 }
  0x98   : > { %v458_v34 = vpack.c.bf16 %v415_v28, %v415_v28  ;;  %v435_v35 = vpack.c.bf16 %v357_v31, %v357_v31 }
  0x99   : > { %v443_v36 = vpack.c.bf16 %v377_v32, %v377_v32  ;;  %483 = vst.msk [vmem:[%s749_s25 + $0x40] sm:$0xf] %vm466_vm2, %v450_v33 }
  0x9a   : > { %491 = vst.msk [vmem:[%s749_s25 + $0x60] sm:$0xf] %vm466_vm2, %v458_v34 }
  0x9b   : > { %468 = vst.msk [vmem:[%s749_s25 + $0x4] sm:$0xf] %vm466_vm2, %v435_v35 }
  0x9c   : > { %476 = vst.msk [vmem:[%s749_s25 + $0x24] sm:$0xf] %vm466_vm2, %v443_v36  ;;  %v396_v37 = vpop.f32.mrf.mxu2 }
  0x9d   : > { %v416_v38 = vpop.f32.mrf.mxu3  ;;  %v397_v39 = vadd.f32 %v740_v18, %v396_v37  ;;  %v359_v41 = vpop.f32.mrf.mxu0 }
  0x9e   : > { %v417_v40 = vadd.f32 %v740_v18, %v416_v38  ;;  %v379_v42 = vpop.f32.mrf.mxu1  ;;  %v360_v43 = vadd.f32 %v740_v18, %v359_v41 }
  0x9f   : > { %v380_v44 = vadd.f32 %v740_v18, %v379_v42  ;;  %v451_v45 = vpack.c.bf16 %v397_v39, %v397_v39 }
  0xa0   : > { %v459_v46 = vpack.c.bf16 %v417_v40, %v417_v40  ;;  %v436_v47 = vpack.c.bf16 %v360_v43, %v360_v43 }
  0xa1   : > { %v444_v48 = vpack.c.bf16 %v380_v44, %v380_v44  ;;  %484 = vst.msk [vmem:[%s749_s25 + $0x44] sm:$0xf] %vm466_vm2, %v451_v45 }
  0xa2   : > { %492 = vst.msk [vmem:[%s749_s25 + $0x64] sm:$0xf] %vm466_vm2, %v459_v46 }
  0xa3   : > { %469 = vst.msk [vmem:[%s749_s25 + $0x8] sm:$0xf] %vm466_vm2, %v436_v47 }
  0xa4   : > { %477 = vst.msk [vmem:[%s749_s25 + $0x28] sm:$0xf] %vm466_vm2, %v444_v48  ;;  %v399_v49 = vpop.f32.mrf.mxu2 }
  0xa5   : > { %v419_v50 = vpop.f32.mrf.mxu3  ;;  %v400_v51 = vadd.f32 %v740_v18, %v399_v49  ;;  %v361_v53 = vpop.f32.mrf.mxu0 }
  0xa6   : > { %v420_v52 = vadd.f32 %v740_v18, %v419_v50  ;;  %v381_v54 = vpop.f32.mrf.mxu1  ;;  %v362_v55 = vadd.f32 %v740_v18, %v361_v53 }
  0xa7   : > { %v382_v56 = vadd.f32 %v740_v18, %v381_v54  ;;  %v452_v57 = vpack.c.bf16 %v400_v51, %v400_v51 }
  0xa8   : > { %v460_v58 = vpack.c.bf16 %v420_v52, %v420_v52  ;;  %v437_v59 = vpack.c.bf16 %v362_v55, %v362_v55 }
  0xa9   : > { %v445_v60 = vpack.c.bf16 %v382_v56, %v382_v56  ;;  %485 = vst.msk [vmem:[%s749_s25 + $0x48] sm:$0xf] %vm466_vm2, %v452_v57 }
  0xaa   : > { %493 = vst.msk [vmem:[%s749_s25 + $0x68] sm:$0xf] %vm466_vm2, %v460_v58 }
  0xab   : > { %470 = vst.msk [vmem:[%s749_s25 + $0xc] sm:$0xf] %vm466_vm2, %v437_v59 }
  0xac   : > { %478 = vst.msk [vmem:[%s749_s25 + $0x2c] sm:$0xf] %vm466_vm2, %v445_v60  ;;  %v401_v61 = vpop.f32.mrf.mxu2 }
  0xad   : > { %v421_v62 = vpop.f32.mrf.mxu3  ;;  %v402_v63 = vadd.f32 %v740_v18, %v401_v61  ;;  %v364_v1 = vpop.f32.mrf.mxu0 }
  0xae   : > { %v422_v0 = vadd.f32 %v740_v18, %v421_v62  ;;  %v384_v2 = vpop.f32.mrf.mxu1  ;;  %v365_v3 = vadd.f32 %v740_v18, %v364_v1 }
  0xaf   : > { %v385_v4 = vadd.f32 %v740_v18, %v384_v2  ;;  %v453_v5 = vpack.c.bf16 %v402_v63, %v402_v63 }
  0xb0   : > { %v461_v6 = vpack.c.bf16 %v422_v0, %v422_v0  ;;  %v438_v7 = vpack.c.bf16 %v365_v3, %v365_v3 }
  0xb1   : > { %v446_v8 = vpack.c.bf16 %v385_v4, %v385_v4  ;;  %486 = vst.msk [vmem:[%s749_s25 + $0x4c] sm:$0xf] %vm466_vm2, %v453_v5 }
  0xb2   : > { %494 = vst.msk [vmem:[%s749_s25 + $0x6c] sm:$0xf] %vm466_vm2, %v461_v6 }
  0xb3   : > { %471 = vst.msk [vmem:[%s749_s25 + $0x10] sm:$0xf] %vm466_vm2, %v438_v7 }
  0xb4   : > { %479 = vst.msk [vmem:[%s749_s25 + $0x30] sm:$0xf] %vm466_vm2, %v446_v8  ;;  %v404_v9 = vpop.f32.mrf.mxu2 }
  0xb5   : > { %v424_v10 = vpop.f32.mrf.mxu3  ;;  %v405_v11 = vadd.f32 %v740_v18, %v404_v9  ;;  %v366_v13 = vpop.f32.mrf.mxu0 }
  0xb6   : > { %v425_v12 = vadd.f32 %v740_v18, %v424_v10  ;;  %v386_v14 = vpop.f32.mrf.mxu1  ;;  %v367_v15 = vadd.f32 %v740_v18, %v366_v13 }
  0xb7   : > { %v387_v16 = vadd.f32 %v740_v18, %v386_v14  ;;  %v454_v17 = vpack.c.bf16 %v405_v11, %v405_v11 }
  0xb8   : > { %v462_v19 = vpack.c.bf16 %v425_v12, %v425_v12  ;;  %v439_v20 = vpack.c.bf16 %v367_v15, %v367_v15 }
  0xb9   : > { %v447_v21 = vpack.c.bf16 %v387_v16, %v387_v16  ;;  %487 = vst.msk [vmem:[%s749_s25 + $0x50] sm:$0xf] %vm466_vm2, %v454_v17 }
  0xba   : > { %495 = vst.msk [vmem:[%s749_s25 + $0x70] sm:$0xf] %vm466_vm2, %v462_v19 }
  0xbb   : > { %472 = vst.msk [vmem:[%s749_s25 + $0x14] sm:$0xf] %vm466_vm2, %v439_v20 }
  0xbc   : > { %480 = vst.msk [vmem:[%s749_s25 + $0x34] sm:$0xf] %vm466_vm2, %v447_v21  ;;  %v406_v22 = vpop.f32.mrf.mxu2 }
  0xbd   : > { %v426_v23 = vpop.f32.mrf.mxu3  ;;  %v407_v24 = vadd.f32 %v740_v18, %v406_v22  ;;  %v369_v26 = vpop.f32.mrf.mxu0 }
  0xbe   : > { %v427_v25 = vadd.f32 %v740_v18, %v426_v23  ;;  %v389_v27 = vpop.f32.mrf.mxu1  ;;  %v370_v28 = vadd.f32 %v740_v18, %v369_v26 }
  0xbf   : > { %v390_v29 = vadd.f32 %v740_v18, %v389_v27  ;;  %v455_v30 = vpack.c.bf16 %v407_v24, %v407_v24 }
  0xc0   : > { %v463_v31 = vpack.c.bf16 %v427_v25, %v427_v25  ;;  %v440_v32 = vpack.c.bf16 %v370_v28, %v370_v28 }
  0xc1   : > { %v448_v33 = vpack.c.bf16 %v390_v29, %v390_v29  ;;  %488 = vst.msk [vmem:[%s749_s25 + $0x54] sm:$0xf] %vm466_vm2, %v455_v30 }
  0xc2   : > { %496 = vst.msk [vmem:[%s749_s25 + $0x74] sm:$0xf] %vm466_vm2, %v463_v31 }
  0xc3   : > { %473 = vst.msk [vmem:[%s749_s25 + $0x18] sm:$0xf] %vm466_vm2, %v440_v32 }
  0xc4   : > { %481 = vst.msk [vmem:[%s749_s25 + $0x38] sm:$0xf] %vm466_vm2, %v448_v33  ;;  %v409_v34 = vpop.f32.mrf.mxu2 }
  0xc5   : > { %v429_v35 = vpop.f32.mrf.mxu3  ;;  %v410_v36 = vadd.f32 %v740_v18, %v409_v34  ;;  %v371_v38 = vpop.f32.mrf.mxu0 }
  0xc6   : > { %v430_v37 = vadd.f32 %v740_v18, %v429_v35  ;;  %v391_v39 = vpop.f32.mrf.mxu1  ;;  %v372_v40 = vadd.f32 %v740_v18, %v371_v38 }
  0xc7   : > { %v392_v41 = vadd.f32 %v740_v18, %v391_v39  ;;  %v456_v42 = vpack.c.bf16 %v410_v36, %v410_v36 }
  0xc8   : > { %v464_v43 = vpack.c.bf16 %v430_v37, %v430_v37  ;;  %v441_v44 = vpack.c.bf16 %v372_v40, %v372_v40 }
  0xc9   : > { %v449_v45 = vpack.c.bf16 %v392_v41, %v392_v41  ;;  %489 = vst.msk [vmem:[%s749_s25 + $0x58] sm:$0xf] %vm466_vm2, %v456_v42 }
  0xca   : > { %497 = vst.msk [vmem:[%s749_s25 + $0x78] sm:$0xf] %vm466_vm2, %v464_v43 }
  0xcb   : > { %474 = vst.msk [vmem:[%s749_s25 + $0x1c] sm:$0xf] %vm466_vm2, %v441_v44 }
  0xcc   : > { %482 = vst.msk [vmem:[%s749_s25 + $0x3c] sm:$0xf] %vm466_vm2, %v449_v45  ;;  %v411_v46 = vpop.f32.mrf.mxu2 }
  0xcd   : > { %v431_v47 = vpop.f32.mrf.mxu3  ;;  %v412_v48 = vadd.f32 %v740_v18, %v411_v46 }
  0xce   : > { %v432_v49 = vadd.f32 %v740_v18, %v431_v47 }
  0xcf   : > { %v457_v50 = vpack.c.bf16 %v412_v48, %v412_v48 }
  0xd0   : > { %v465_v51 = vpack.c.bf16 %v432_v49, %v432_v49 }
  0xd1   : > { %490 = vst.msk [vmem:[%s749_s25 + $0x5c] sm:$0xf] %vm466_vm2, %v457_v50 }
  0xd2   : > { %498 = vst.msk [vmem:[%s749_s25 + $0x7c] sm:$0xf] %vm466_vm2, %v465_v51 }
  0xd3 PF: > { %s13_s12 = sadd.s32 1, %s680_s12  }
  0xd4   : > { %p10_p4 = scmp.ge.s32.totalorder %s13_s12, 4  }
  0xd6   :  { %12 = sbr.rel (!%p10_p4) target bundleno = 1 (0x1), region = 62 }

</bundles_post_ra>
